<compile_context>
chip_gen: v7x
topology: tpu7x:2x2x1
jax: 0.10.0
libtpu: 0.0.40
codegen_flags: <defaults>
</compile_context>

<pallas_src>
import jax
import jax.numpy as jnp
from jax import lax
from jax.experimental import pallas as pl
from jax.experimental.pallas import tpu as pltpu

# ---- model hyper-parameters (LocalRMPGNN defaults) ---------------------------
NODE_F   = 5     # node_features
HID      = 64    # hidden_size
RNN      = 20    # rnn_size
RNN_E    = 8     # rnn_edge_size
LATENT   = 32    # latent_edge_features
OUT_F    = 4     # out_features
MAP_ENC  = 32    # map_encoding_size

SLAB_W   = 128   # lane-dense slab width (both input state and output)

# input state-slab column layout: [ x | h_node | c_node | h_edge | c_edge | u ]
X_OFF  = 0
HN_OFF = X_OFF + NODE_F              # 5
CN_OFF = HN_OFF + RNN                # 25
HE_OFF = CN_OFF + RNN                # 45
CE_OFF = HE_OFF + RNN_E              # 53
U_OFF  = CE_OFF + RNN_E              # 61
STATE_W = U_OFF + MAP_ENC            # 93  (<= 128)

# output slab column layout: [ out | h_node | c_node | h_edge | c_edge ]
O_OUT = 0
O_HN  = O_OUT + OUT_F                # 4
O_CN  = O_HN + RNN                   # 24
O_HE  = O_CN + RNN                   # 44
O_CE  = O_HE + RNN_E                 # 52
PACK_W = O_CE + RNN_E                # 60

# phase-1 (edge) weight slab: bf16 [EW_ROWS, HID]
EW_W1_ROW = 0                        # rows 0:10   cols 0:HID     (fused [src|dst] W1)
EW_W2_ROW = 16                       # rows 16:80  cols 0:LATENT  (W2)
EW_ROWS   = EW_W2_ROW + HID          # 80

# phase-2 (node) weight slab: f32 [NK_ROWS, 128] (8-aligned row offsets)
NK_WN_ROW  = 0                       # rows 0:25    cols 0:4*RNN   fused node LSTM W
NK_WE_ROW  = 32                      # rows 32:72   cols 0:4*RNN_E fused edge LSTM W
NK_WO1_ROW = 72                      # rows 72:132  cols 0:HID     fused output MLP W1
NK_WO2_ROW = 136                     # rows 136:200 cols 0:OUT_F   output MLP W2
NK_B_ROW   = 200                     # rows 200..203: b_n, b_e, bo1, bo2
NK_ROWS    = 208

NCORES = 2                           # v7x TensorCores to split the edge phase across

# ---- small test shapes -------------------------------------------------------
N_NODES = 8
N_EDGES = 16


def _round_up(a, m):
    return (a + m - 1) // m * m


def _cdiv(a, b):
    return (a + b - 1) // b


# ==============================================================================
# Phase 1: edge MLP + one-hot scatter-add into a per-core [N_pad, LATENT] accum.
# grid = (NCORES, edge_tiles_per_core), semantics ("parallel", "arbitrary").
# ==============================================================================
def edge_message_kernel(ef_ref, col_ref, ew_ref, eb_ref, agg_ref):
    j = pl.program_id(1)

    @pl.when(j == 0)
    def _():
        agg_ref[...] = jnp.zeros_like(agg_ref)

    te = ef_ref.shape[0]
    n_pad = agg_ref.shape[1]

    # fused edge MLP: relu([src|dst] @ W1 + b1) @ W2 + b2 (bf16 MXU, f32 accumulate)
    ef = ef_ref[...]                                            # [te, 2F] bf16
    ew = ew_ref[...]
    eb = eb_ref[...]
    w1 = ew[EW_W1_ROW:EW_W1_ROW + 2 * NODE_F, :]                # [10, HID] bf16
    w2 = ew[EW_W2_ROW:EW_W2_ROW + HID, 0:LATENT]                # [HID, LATENT] bf16
    b1 = eb[0:1, 0:HID]
    b2 = eb[1:2, 0:LATENT]
    h1 = jnp.maximum(jnp.dot(ef, w1, preferred_element_type=jnp.float32) + b1, 0.0)
    msgs = (jnp.dot(h1.astype(jnp.bfloat16), w2,
                    preferred_element_type=jnp.float32) + b2)   # [te, LATENT] f32

    # scatter-add onto destination nodes; padded edges carry col = -1 -> no match.
    # msgs stay f32 (no truncation before aggregation); one-hot is exact in f32.
    onehot = (lax.broadcasted_iota(jnp.int32, (n_pad, te), 0)
              == col_ref[...]).astype(jnp.float32)              # [n_pad, te]
    agg_ref[0] += jnp.dot(onehot, msgs, preferred_element_type=jnp.float32)


# ==============================================================================
# Phase 2: per-node-block LSTM steps + output MLP, one lane-dense slab store.
# grid = (node_blocks,), semantics ("parallel",).
# ==============================================================================
def _lstm_gates(gates, c_prev, hsize):
    """PyTorch LSTMCell gate math (gate order i, f, g, o); f32 throughout."""
    i = jax.nn.sigmoid(gates[:, 0 * hsize:1 * hsize])
    f = jax.nn.sigmoid(gates[:, 1 * hsize:2 * hsize])
    g = jnp.tanh(gates[:, 2 * hsize:3 * hsize])
    o = jax.nn.sigmoid(gates[:, 3 * hsize:4 * hsize])
    c_new = f * c_prev + i * g
    h_new = o * jnp.tanh(c_new)
    return h_new, c_new


def node_update_kernel(state_ref, agg_ref, wk_ref, slab_ref):
    tn = state_ref.shape[0]
    st = state_ref[...]                                         # [tn, 128] f32
    wk = wk_ref[...]                                            # [NK_ROWS, 128] f32

    xh = st[:, X_OFF:X_OFF + NODE_F + RNN]                      # [x | h_node] contiguous
    cn = st[:, CN_OFF:CN_OFF + RNN]
    he = st[:, HE_OFF:HE_OFF + RNN_E]
    ce = st[:, CE_OFF:CE_OFF + RNN_E]
    u  = st[:, U_OFF:U_OFF + MAP_ENC]

    agg = agg_ref[0] + agg_ref[1]                               # sum per-core partials

    w_n = wk[NK_WN_ROW:NK_WN_ROW + NODE_F + RNN, 0:4 * RNN]
    w_e = wk[NK_WE_ROW:NK_WE_ROW + LATENT + RNN_E, 0:4 * RNN_E]
    wo1 = wk[NK_WO1_ROW:NK_WO1_ROW + RNN + RNN_E + MAP_ENC, 0:HID]
    wo2 = wk[NK_WO2_ROW:NK_WO2_ROW + HID, 0:OUT_F]
    b_n = wk[NK_B_ROW + 0:NK_B_ROW + 1, 0:4 * RNN]
    b_e = wk[NK_B_ROW + 1:NK_B_ROW + 2, 0:4 * RNN_E]
    bo1 = wk[NK_B_ROW + 2:NK_B_ROW + 3, 0:HID]
    bo2 = wk[NK_B_ROW + 3:NK_B_ROW + 4, 0:OUT_F]

    # node-history LSTM step (single fused [x|h] @ W matmul)
    gates_n = jnp.dot(xh, w_n, preferred_element_type=jnp.float32) + b_n
    hn_new, cn_new = _lstm_gates(gates_n, cn, RNN)

    # edge-history LSTM step on aggregated messages (single fused [agg|h] @ W matmul)
    eh_in = jnp.concatenate([agg, he], axis=-1)                 # [tn, LATENT+RNN_E]
    gates_e = jnp.dot(eh_in, w_e, preferred_element_type=jnp.float32) + b_e
    he_new, ce_new = _lstm_gates(gates_e, ce, RNN_E)

    # output MLP on cat([node_hist, edge_hist, u]) (single fused matmul per layer)
    mlp_in = jnp.concatenate([hn_new, he_new, u], axis=-1)      # [tn, 60]
    h1 = jnp.maximum(jnp.dot(mlp_in, wo1, preferred_element_type=jnp.float32) + bo1, 0.0)
    out = jnp.dot(h1, wo2, preferred_element_type=jnp.float32) + bo2

    pad = jnp.zeros((tn, SLAB_W - PACK_W), jnp.float32)
    slab_ref[...] = jnp.concatenate([out, hn_new, cn_new, he_new, ce_new, pad], axis=-1)


# ==============================================================================
# Parameters (fused layouts) + packing into the kernel weight slabs.
# ==============================================================================
def init_params(key):
    ks = jax.random.split(key, 12)

    def uni(k, shape, fan_in):
        bound = 1.0 / (fan_in ** 0.5)
        return jax.random.uniform(k, shape, jnp.float32, -bound, bound)

    p = {}
    # node-history LSTM, fused [x|h] weight, in=NODE_F, hid=RNN
    p["w_n"] = uni(ks[0], (NODE_F + RNN, 4 * RNN), RNN)
    p["b_n"] = uni(ks[1], (4 * RNN,), RNN)
    # edge MLP (2*NODE_F -> HID -> LATENT), fused [src|dst] layer-1 weight
    p["w1"] = uni(ks[2], (2 * NODE_F, HID), 2 * NODE_F)
    p["b1"] = uni(ks[3], (HID,), 2 * NODE_F)
    p["w2"] = uni(ks[4], (HID, LATENT), HID)
    p["b2"] = uni(ks[5], (LATENT,), HID)
    # edge-history LSTM, fused [agg|h] weight, in=LATENT, hid=RNN_E
    p["w_e"] = uni(ks[6], (LATENT + RNN_E, 4 * RNN_E), RNN_E)
    p["b_e"] = uni(ks[7], (4 * RNN_E,), RNN_E)
    # output MLP (RNN + RNN_E + MAP_ENC -> HID -> OUT_F), fused layer-1 weight
    fin = RNN + RNN_E + MAP_ENC
    p["wo1"] = uni(ks[8], (fin, HID), fin)
    p["bo1"] = uni(ks[9], (HID,), fin)
    p["wo2"] = uni(ks[10], (HID, OUT_F), HID)
    p["bo2"] = uni(ks[11], (OUT_F,), HID)
    return p


def _pack_edge_weights(p):
    w = jnp.zeros((EW_ROWS, HID), jnp.bfloat16)
    w = w.at[EW_W1_ROW:EW_W1_ROW + 2 * NODE_F, :HID].set(p["w1"].astype(jnp.bfloat16))
    w = w.at[EW_W2_ROW:EW_W2_ROW + HID, :LATENT].set(p["w2"].astype(jnp.bfloat16))
    b = jnp.zeros((8, HID), jnp.float32)
    b = b.at[0, :HID].set(p["b1"])
    b = b.at[1, :LATENT].set(p["b2"])
    return w, b


def _pack_node_weights(p):
    wk = jnp.zeros((NK_ROWS, SLAB_W), jnp.float32)
    wk = wk.at[NK_WN_ROW:NK_WN_ROW + NODE_F + RNN, :4 * RNN].set(p["w_n"])
    wk = wk.at[NK_WE_ROW:NK_WE_ROW + LATENT + RNN_E, :4 * RNN_E].set(p["w_e"])
    wk = wk.at[NK_WO1_ROW:NK_WO1_ROW + RNN + RNN_E + MAP_ENC, :HID].set(p["wo1"])
    wk = wk.at[NK_WO2_ROW:NK_WO2_ROW + HID, :OUT_F].set(p["wo2"])
    wk = wk.at[NK_B_ROW + 0, :4 * RNN].set(p["b_n"])
    wk = wk.at[NK_B_ROW + 1, :4 * RNN_E].set(p["b_e"])
    wk = wk.at[NK_B_ROW + 2, :HID].set(p["bo1"])
    wk = wk.at[NK_B_ROW + 3, :OUT_F].set(p["bo2"])
    return wk


# ==============================================================================
# Wrapper mirroring LocalRMPGNN.forward.
# ==============================================================================
def rmpgnn_forward(x, edge_index, edge_attr, u, hidden, params,
                   *, tn_max=256, te_max=512):
    """x: [N, NODE_F] f32; edge_index: [2, E] int32; edge_attr must be None
       (edge_features=0); u: [N, MAP_ENC] f32; hidden = ((h_n, c_n), (h_e, c_e))
       each [1, N, RNN] / [1, N, RNN_E]."""
    assert edge_attr is None, "edge_features=0 in LocalRMPGNN; edge_attr unused"
    h_node, h_edge = hidden
    n, e = x.shape[0], edge_index.shape[1]

    # ---- tile sizes ----------------------------------------------------------
    n8 = _round_up(max(n, 8), 8)
    tn = min(tn_max, n8)
    n_pad = _round_up(n8, tn)
    nb = n_pad // tn

    e128 = _round_up(max(e, 128), 128)
    # cap te so the scatter one-hot temporaries (~8 B * n_pad * te) stay well under VMEM
    te_cap = max(128, (16 * 1024 * 1024 // (8 * n_pad)) // 128 * 128)
    te = min(te_max, e128, te_cap)
    ebpc = _cdiv(_cdiv(e128, te), NCORES)          # edge tiles per core
    e_pad = NCORES * ebpc * te

    # ---- wrapper-side gather of src/dst features (layout plumbing only) -------
    row = edge_index[0].astype(jnp.int32)
    col = edge_index[1].astype(jnp.int32)
    ef = jnp.concatenate([x[row], x[col]], axis=-1).astype(jnp.bfloat16)   # [E, 2F]
    ef_p = jnp.zeros((e_pad, 2 * NODE_F), jnp.bfloat16).at[:e].set(ef)
    col_l = jnp.full((1, e_pad), -1, jnp.int32).at[0, :e].set(col)

    # ---- packed per-node input state slab (lane-dense, single input stream) ---
    state = jnp.zeros((n_pad, SLAB_W), jnp.float32)
    state = state.at[:n, X_OFF:X_OFF + NODE_F].set(x)
    state = state.at[:n, HN_OFF:HN_OFF + RNN].set(h_node[0][0])
    state = state.at[:n, CN_OFF:CN_OFF + RNN].set(h_node[1][0])
    state = state.at[:n, HE_OFF:HE_OFF + RNN_E].set(h_edge[0][0])
    state = state.at[:n, CE_OFF:CE_OFF + RNN_E].set(h_edge[1][0])
    state = state.at[:n, U_OFF:U_OFF + MAP_ENC].set(u)

    ew_slab, eb_slab = _pack_edge_weights(params)
    nk_slab = _pack_node_weights(params)

    # ---- VMEM budget from the chip (48 MiB on v7x, 96 MiB on v5e/v6e) ---------
    try:
        vmem_cap = pltpu.get_tpu_info().vmem_capacity_bytes
    except Exception:
        vmem_cap = 64 * 1024 * 1024
    vmem_limit = int(min((3 * vmem_cap) // 4, 100 * 1024 * 1024))

    # ---- phase 1: edge messages + scatter-add (runs once, split across cores) -
    agg = pl.pallas_call(
        edge_message_kernel,
        out_shape=jax.ShapeDtypeStruct((NCORES, n_pad, LATENT), jnp.float32),
        grid_spec=pltpu.PrefetchScalarGridSpec(
            num_scalar_prefetch=0,
            grid=(NCORES, ebpc),
            in_specs=[
                pl.BlockSpec((te, 2 * NODE_F), lambda c, j: (c * ebpc + j, 0)),
                pl.BlockSpec((1, te),          lambda c, j: (0, c * ebpc + j)),
                pl.BlockSpec((EW_ROWS, HID),   lambda c, j: (0, 0)),
                pl.BlockSpec((8, HID),         lambda c, j: (0, 0)),
            ],
            out_specs=pl.BlockSpec((1, n_pad, LATENT), lambda c, j: (c, 0, 0)),
        ),
        compiler_params=pltpu.CompilerParams(
            dimension_semantics=("parallel", "arbitrary"),
            vmem_limit_bytes=vmem_limit),
        cost_estimate=pl.CostEstimate(
            flops=int(2 * e_pad * (2 * NODE_F * HID + HID * LATENT)
                      + 2 * e_pad * n_pad * LATENT),
            transcendentals=0,
            bytes_accessed=int(ef_p.size * 2 + col_l.size * 4 + ew_slab.size * 2
                               + eb_slab.size * 4 + NCORES * n_pad * LATENT * 4)),
    )(ef_p, col_l, ew_slab, eb_slab)

    # ---- phase 2: node LSTMs + output MLP, lane-dense 128-wide slab output ----
    slab = pl.pallas_call(
        node_update_kernel,
        out_shape=jax.ShapeDtypeStruct((n_pad, SLAB_W), jnp.float32),
        grid_spec=pltpu.PrefetchScalarGridSpec(
            num_scalar_prefetch=0,
            grid=(nb,),
            in_specs=[
                pl.BlockSpec((tn, SLAB_W),          lambda i: (i, 0)),
                pl.BlockSpec((NCORES, tn, LATENT),  lambda i: (0, i, 0)),
                pl.BlockSpec((NK_ROWS, SLAB_W),     lambda i: (0, 0)),
            ],
            out_specs=pl.BlockSpec((tn, SLAB_W), lambda i: (i, 0)),
        ),
        compiler_params=pltpu.CompilerParams(
            dimension_semantics=("parallel",),
            vmem_limit_bytes=vmem_limit),
        cost_estimate=pl.CostEstimate(
            flops=int(2 * n_pad * ((NODE_F + RNN) * 4 * RNN
                                   + (LATENT + RNN_E) * 4 * RNN_E
                                   + (RNN + RNN_E + MAP_ENC) * HID
                                   + HID * OUT_F)),
            transcendentals=int(5 * n_pad * (RNN + RNN_E)),
            bytes_accessed=int(2 * n_pad * SLAB_W * 4
                               + NCORES * n_pad * LATENT * 4
                               + NK_ROWS * SLAB_W * 4)),
    )(state, agg, nk_slab)

    # ---- split the lane-dense slab (layout plumbing only) ---------------------
    out    = slab[:n, O_OUT:O_OUT + OUT_F]
    hn_new = slab[:n, O_HN:O_HN + RNN]
    cn_new = slab[:n, O_CN:O_CN + RNN]
    he_new = slab[:n, O_HE:O_HE + RNN_E]
    ce_new = slab[:n, O_CE:O_CE + RNN_E]
    h_node_new = (hn_new[None], cn_new[None])
    h_edge_new = (he_new[None], ce_new[None])
    return out, (h_node_new, h_edge_new)


# ==============================================================================
# Pure-JAX reference (same math, f32) for a sanity check.
# ==============================================================================
def _ref_lstm(xh, c, w, b, hsize):
    gates = xh @ w + b
    i = jax.nn.sigmoid(gates[:, :hsize])
    f = jax.nn.sigmoid(gates[:, hsize:2 * hsize])
    g = jnp.tanh(gates[:, 2 * hsize:3 * hsize])
    o = jax.nn.sigmoid(gates[:, 3 * hsize:])
    c_new = f * c + i * g
    return o * jnp.tanh(c_new), c_new


def rmpgnn_reference(x, edge_index, u, hidden, p):
    h_node, h_edge = hidden
    row, col = edge_index[0], edge_index[1]
    hn, cn = _ref_lstm(jnp.concatenate([x, h_node[0][0]], -1), h_node[1][0],
                       p["w_n"], p["b_n"], RNN)
    ef = jnp.concatenate([x[row], x[col]], -1)
    h1 = jnp.maximum(ef @ p["w1"] + p["b1"], 0.0)
    messages = h1 @ p["w2"] + p["b2"]
    agg = jnp.zeros((x.shape[0], LATENT), jnp.float32).at[col].add(messages)
    he, ce = _ref_lstm(jnp.concatenate([agg, h_edge[0][0]], -1), h_edge[1][0],
                       p["w_e"], p["b_e"], RNN_E)
    h1o = jnp.maximum(jnp.concatenate([hn, he, u], -1) @ p["wo1"] + p["bo1"], 0.0)
    out = h1o @ p["wo2"] + p["bo2"]
    return out, (hn, cn, he, ce)


if __name__ == "__main__":
    key = jax.random.PRNGKey(0)
    ks = jax.random.split(key, 8)

    x = jax.random.normal(ks[0], (N_NODES, NODE_F), jnp.float32)
    edge_index = jax.random.randint(ks[1], (2, N_EDGES), 0, N_NODES, jnp.int32)
    u = jax.random.normal(ks[2], (N_NODES, MAP_ENC), jnp.float32)
    h_node = (0.1 * jax.random.normal(ks[3], (1, N_NODES, RNN), jnp.float32),
              0.1 * jax.random.normal(ks[4], (1, N_NODES, RNN), jnp.float32))
    h_edge = (0.1 * jax.random.normal(ks[5], (1, N_NODES, RNN_E), jnp.float32),
              0.1 * jax.random.normal(ks[6], (1, N_NODES, RNN_E), jnp.float32))
    params = init_params(ks[7])

    out, (h_node_new, h_edge_new) = rmpgnn_forward(
        x, edge_index, None, u, (h_node, h_edge), params)
    jax.block_until_ready(out)
    jax.block_until_ready(h_node_new)
    jax.block_until_ready(h_edge_new)

    # sanity check vs pure-JAX reference
    ref_out, (r_hn, r_cn, r_he, r_ce) = rmpgnn_reference(
        x, edge_index, u, (h_node, h_edge), params)
    assert out.shape == (N_NODES, OUT_F)
    assert h_node_new[0].shape == (1, N_NODES, RNN)
    assert h_edge_new[0].shape == (1, N_NODES, RNN_E)
    assert jnp.allclose(out, ref_out, rtol=3e-2, atol=3e-2)
    assert jnp.allclose(h_node_new[0][0], r_hn, rtol=3e-2, atol=3e-2)
    assert jnp.allclose(h_node_new[1][0], r_cn, rtol=3e-2, atol=3e-2)
    assert jnp.allclose(h_edge_new[0][0], r_he, rtol=3e-2, atol=3e-2)
    assert jnp.allclose(h_edge_new[1][0], r_ce, rtol=3e-2, atol=3e-2)

    print("KERNEL_OK")
</pallas_src>

<mosaic_0001>
module attributes {stable_mosaic.version = 11 : i64} {
  func.func @edge_message_kernel(%arg0: i32, %arg1: i32, %arg2: memref<128x10xbf16, #tpu.memory_space<vmem>>, %arg3: memref<1x128xi32, #tpu.memory_space<vmem>>, %arg4: memref<80x64xbf16, #tpu.memory_space<vmem>>, %arg5: memref<8x64xf32, #tpu.memory_space<vmem>>, %arg6: memref<1x8x32xf32, #tpu.memory_space<vmem>>) attributes {dimension_semantics = [#tpu.dimension_semantics<parallel>, #tpu.dimension_semantics<arbitrary>], iteration_bounds = array<i64: 2, 1>, scalar_prefetch = 0 : i64, scratch_operands = 0 : i64, tpu.core_type = #tpu.core_type<tc>, window_params = [{transform_indices = @transform_0, window_bounds = array<i64: 128, 10>}, {transform_indices = @transform_1, window_bounds = array<i64: 1, 128>}, {pipeline_mode = #tpu.pipeline_mode<synchronous>, transform_indices = @transform_2, window_bounds = array<i64: 80, 64>}, {pipeline_mode = #tpu.pipeline_mode<synchronous>, transform_indices = @transform_3, window_bounds = array<i64: 8, 64>}, {transform_indices = @transform_4, window_bounds = array<i64: 1, 8, 32>}]} {
    %c0_i32 = arith.constant 0 : i32
    %0 = arith.cmpi eq, %arg1, %c0_i32 : i32
    %1 = arith.extui %0 : i1 to i32
    %c0_i32_0 = arith.constant 0 : i32
    %2 = arith.cmpi ne, %1, %c0_i32_0 : i32
    scf.if %2 {
      %cst_17 = arith.constant 0.000000e+00 : f32
      %32 = vector.broadcast %cst_17 : f32 to vector<1x8x32xf32>
      %c0_18 = arith.constant 0 : index
      %c0_19 = arith.constant 0 : index
      %c0_20 = arith.constant 0 : index
      %33 = vector.load %arg6[%c0_18, %c0_19, %c0_20] : memref<1x8x32xf32, #tpu.memory_space<vmem>>, vector<1x8x32xf32>
      tpu.vector_store %arg6[%c0_18, %c0_19, %c0_20], %32 {strides = array<i32>} : memref<1x8x32xf32, #tpu.memory_space<vmem>>, vector<1x8x32xf32>,
    } else {
    }
    %c0 = arith.constant 0 : index
    %c0_1 = arith.constant 0 : index
    %3 = vector.load %arg2[%c0, %c0_1] : memref<128x10xbf16, #tpu.memory_space<vmem>>, vector<128x10xbf16>
    %c0_2 = arith.constant 0 : index
    %c0_3 = arith.constant 0 : index
    %4 = vector.load %arg4[%c0_2, %c0_3] : memref<80x64xbf16, #tpu.memory_space<vmem>>, vector<80x64xbf16>
    %c0_4 = arith.constant 0 : index
    %c0_5 = arith.constant 0 : index
    %5 = vector.load %arg5[%c0_4, %c0_5] : memref<8x64xf32, #tpu.memory_space<vmem>>, vector<8x64xf32>
    %6 = vector.extract_strided_slice %4 {offsets = [0, 0], sizes = [10, 64], strides = [1, 1]} : vector<80x64xbf16> to vector<10x64xbf16>
    %7 = vector.extract_strided_slice %4 {offsets = [16, 0], sizes = [64, 32], strides = [1, 1]} : vector<80x64xbf16> to vector<64x32xbf16>
    %8 = vector.extract_strided_slice %5 {offsets = [0, 0], sizes = [1, 64], strides = [1, 1]} : vector<8x64xf32> to vector<1x64xf32>
    %9 = vector.extract_strided_slice %5 {offsets = [1, 0], sizes = [1, 32], strides = [1, 1]} : vector<8x64xf32> to vector<1x32xf32>
    %cst = arith.constant dense<0.000000e+00> : vector<128x64xf32>
    %10 = tpu.matmul %3, %6, %cst {dimension_numbers = #tpu.dot_dimension_numbers<[1], [0], [0], [1], [0, 0, 1, 1], [], []>} : vector<128x10xbf16>, vector<10x64xbf16>, vector<128x64xf32> -> vector<128x64xf32>
    %11 = vector.broadcast %8 : vector<1x64xf32> to vector<128x64xf32>
    %12 = arith.addf %10, %11 : vector<128x64xf32>
    %cst_6 = arith.constant 0.000000e+00 : f32
    %13 = vector.broadcast %cst_6 : f32 to vector<128x64xf32>
    %14 = arith.maximumf %12, %13 : vector<128x64xf32>
    %15 = arith.truncf %14 : vector<128x64xf32> to vector<128x64xbf16>
    %cst_7 = arith.constant dense<0.000000e+00> : vector<128x32xf32>
    %16 = tpu.matmul %15, %7, %cst_7 {dimension_numbers = #tpu.dot_dimension_numbers<[1], [0], [0], [1], [0, 0, 1, 1], [], []>} : vector<128x64xbf16>, vector<64x32xbf16>, vector<128x32xf32> -> vector<128x32xf32>
    %17 = vector.broadcast %9 : vector<1x32xf32> to vector<128x32xf32>
    %18 = arith.addf %16, %17 : vector<128x32xf32>
    %19 = tpu.iota {dimensions = array<i32: 0>} : vector<8x128xi32>
    %c0_8 = arith.constant 0 : index
    %c0_9 = arith.constant 0 : index
    %20 = vector.load %arg3[%c0_8, %c0_9] : memref<1x128xi32, #tpu.memory_space<vmem>>, vector<1x128xi32>
    %21 = vector.broadcast %20 : vector<1x128xi32> to vector<8x128xi32>
    %22 = arith.cmpi eq, %19, %21 : vector<8x128xi32>
    %23 = arith.extui %22 : vector<8x128xi1> to vector<8x128xi32>
    %24 = arith.sitofp %23 : vector<8x128xi32> to vector<8x128xf32>
    %c0_10 = arith.constant 0 : index
    %c0_11 = arith.constant 0 : index
    %c0_12 = arith.constant 0 : index
    %25 = vector.load %arg6[%c0_10, %c0_11, %c0_12] : memref<1x8x32xf32, #tpu.memory_space<vmem>>, vector<1x8x32xf32>
    %26 = vector.shape_cast %25 : vector<1x8x32xf32> to vector<8x32xf32>
    %cst_13 = arith.constant dense<0.000000e+00> : vector<8x32xf32>
    %27 = tpu.matmul %24, %18, %cst_13 {dimension_numbers = #tpu.dot_dimension_numbers<[1], [0], [0], [1], [0, 0, 1, 1], [], []>} : vector<8x128xf32>, vector<128x32xf32>, vector<8x32xf32> -> vector<8x32xf32>
    %28 = arith.addf %26, %27 : vector<8x32xf32>
    %c0_14 = arith.constant 0 : index
    %c0_15 = arith.constant 0 : index
    %c0_16 = arith.constant 0 : index
    %29 = vector.load %arg6[%c0_14, %c0_15, %c0_16] : memref<1x8x32xf32, #tpu.memory_space<vmem>>, vector<1x8x32xf32>
    %30 = vector.shape_cast %29 : vector<1x8x32xf32> to vector<8x32xf32>
    %31 = vector.shape_cast %28 : vector<8x32xf32> to vector<1x8x32xf32>
    tpu.vector_store %arg6[%c0_14, %c0_15, %c0_16], %31 {strides = array<i32>} : memref<1x8x32xf32, #tpu.memory_space<vmem>>, vector<1x8x32xf32>,
    return
  }
  func.func @transform_0(%arg0: i32, %arg1: i32) -> (i32, i32) {
    %c1_i32 = arith.constant 1 : i32
    %0 = arith.muli %arg0, %c1_i32 : i32
    %1 = arith.addi %0, %arg1 : i32
    %c0_i32 = arith.constant 0 : i32
    %c0_i32_0 = arith.constant 0 : i32
    return %1, %c0_i32 : i32, i32
  }
  func.func @transform_1(%arg0: i32, %arg1: i32) -> (i32, i32) {
    %c1_i32 = arith.constant 1 : i32
    %0 = arith.muli %arg0, %c1_i32 : i32
    %1 = arith.addi %0, %arg1 : i32
    %c0_i32 = arith.constant 0 : i32
    %c0_i32_0 = arith.constant 0 : i32
    return %c0_i32, %1 : i32, i32
  }
  func.func @transform_2(%arg0: i32, %arg1: i32) -> (i32, i32) {
    %c0_i32 = arith.constant 0 : i32
    %c0_i32_0 = arith.constant 0 : i32
    %c0_i32_1 = arith.constant 0 : i32
    return %c0_i32, %c0_i32_0 : i32, i32
  }
  func.func @transform_3(%arg0: i32, %arg1: i32) -> (i32, i32) {
    %c0_i32 = arith.constant 0 : i32
    %c0_i32_0 = arith.constant 0 : i32
    %c0_i32_1 = arith.constant 0 : i32
    return %c0_i32, %c0_i32_0 : i32, i32
  }
  func.func @transform_4(%arg0: i32, %arg1: i32) -> (i32, i32, i32) {
    %c0_i32 = arith.constant 0 : i32
    %c0_i32_0 = arith.constant 0 : i32
    %c0_i32_1 = arith.constant 0 : i32
    return %arg0, %c0_i32, %c0_i32_0 : i32, i32, i32
  }
}

</mosaic_0001>

<bundles_post_ra>
// kernel: tpu_custom_call.1
= control target key start
LH: loop header
LB: loop body
LE: loop exit
PB: predicated region body
PF: predicated region fallthrough
CT: control target
= control target key end

     0   :  { %9 = vsyncpa [#allocation3], 0  ;;  %s1340_s0 = inlined_call_operand.vmem [shape: bf16[256,10], index: 0, kind: input, shape index: {}]   ;;  %s1341_s1 = inlined_call_operand.vmem [shape: s32[1,256], index: 1, kind: input, shape index: {}]   ;;  %s1342_s2 = inlined_call_operand.vmem [shape: bf16[80,64], index: 2, kind: input, shape index: {}]   ;;  %s1343_s3 = inlined_call_operand.vmem [shape: f32[8,64], index: 3, kind: input, shape index: {}]   ;;  %s1344_s4 = inlined_call_operand.hbm [shape: f32[2,8,32], index: 4, kind: output, shape index: {}]  }
   0x1   :  { %11 = vsyncpa [#allocation3 + $0x1], 0  ;;  %s1161_s15 = smov 0   ;;  %s1163_s16 = smov 0  }
   0x2   :  { %s1165_s17 = smov 0   ;;  %s1167_s18 = smov 0  }
   0x3   :  { %s1169_s19 = smov 0   ;;  %s1171_s20 = smov 0  }
   0x4 LB: > { %s795_s21 = sadd.s32 4294967295, %s1129_s20   ;;  %s796_s22 = sadd.s32 4294967294, %s1129_s20   ;;  %s1129_s20 = sphi %s1171_s20, %s17_s20   ;;  %s1125_s19 = sphi %s1169_s19, %s1351_s19   ;;  %s1121_s18 = sphi %s1167_s18, %s1350_s18   ;;  %s1117_s17 = sphi %s1165_s17, %s1349_s17   ;;  %s1113_s16 = sphi %s1163_s16, %s1348_s16   ;;  %s1109_s15 = sphi %s1161_s15, %s1347_s15  }
   0x5   : > { %s29_s23 = sadd.s32 1, %s1125_s19  ;;  %s134_s24 = sadd.s32 1, %s1117_s17 }
   0x6   : > { %p31_p0 = scmp.ge.s32.totalorder %s29_s23, 2  ;;  %p144_p1 = scmp.ne.s32.totalorder %s1117_s17, %s1113_s16 }
   0x7   : > { %p145_p2 = scmp.eq.s32.totalorder %s795_s21, 1  ;;  %p150_p3 = scmp.ne.s32.totalorder %s1113_s16, %s1109_s15 }
   0x8   : > { %s1353_s23 = smov (%p31_p0, %s29_s23), 0  ;;  %p151_p5 = scmp.eq.s32.totalorder %s796_s22, 1 }
   0x9   : > { %p1201_p4 = por %p145_p2, %p144_p1  ;;  %s131_s26 = ssub.s32 %s1125_s19, %s1353_s23 }
   0xa   : > { %p799_p6 = scmp.ge.s32.totalorder %s1129_s20, 1  ;;  %p132_p7 = scmp.eq.s32.totalorder %s131_s26, 0 }
   0xb   : > { %p1208_p8 = por %p151_p5, %p150_p3  ;;  %p194_p9 = scmp.lt.s32.totalorder %s1129_s20, 3 }
   0xc   : > { %s1214_s28 = scalar_select %p132_p7, %s1117_s17, %s134_s24  }
   0xd   : > { %p195_p10 = pnand %p799_p6, %p194_p9 }
   0xe   : > { %v1038_v0 = vld [vmem:[%s1342_s2] sm:$0xff] (!%p195_p10)   ;;  %vm346_vm0 = vcmask (!%p195_p10), 1044480   ;;  %s801_s5 = sshll.u32 (!%p195_p10), %s1121_s18, 4  ;;  %v1047_v2 = vld [vmem:[%s1342_s2 + $0x8] sm:$0xff] (!%p195_p10)   ;;  %v1048_v3 = vld [vmem:[%s1342_s2 + $0x10] sm:$0xff] (!%p195_p10)   ;;  %vm321_vm1 = vcmask (!%p195_p10), 80896   ;;  %v272_v14 = vlaneseq (!%p195_p10) }
   0xf   : > { %198 = sbr.rel (%p195_p10) target bundleno = 727 (0x2d7), region = 36  ;;  %978 = vmatprep.subr.msk.bf16.mxu0 (!%p195_p10), %vm346_vm0, %v1038_v0  ;;  %v348_v1 = vsel (!%p195_p10), %vm346_vm0, %v1038_v0, 0  ;;  %p227_p11 = scmp.lt.s32.totalorder (!%p195_p10), %s801_s5, 31  ;;  %895 = vmatprep.subr.bf16.mxu1 (!%p195_p10), %v1047_v2  ;;  %v1049_v12 = vld [vmem:[%s1342_s2 + $0x18] sm:$0xff] (!%p195_p10)   ;;  %v1050_v13 = vld [vmem:[%s1342_s2 + $0x20] sm:$0xff] (!%p195_p10)   ;;  %vm499_vm2 = vcmask (!%p195_p10), 523264  }
  0x10   : > { %878 = vmatpush3.bf16.msra.mxu0 (!%p195_p10), %v348_v1  ;;  %896 = vmatpush3.bf16.msra.mxu1 (!%p195_p10), %v1047_v2  ;;  %v1243_v15 = vshrl.u32 (!%p195_p10), %v272_v14, 7  ;;  %v1249_v17 = vld [vmem:[%s1343_s3] sm:$0xff] (!%p195_p10)  ;;  %vm1132_vm3 = vmmov (!%p195_p10), 0   ;;  %s222_s30 = sand.u32 (!%p195_p10), 1, %s1113_s16   ;;  %vm243_vm4 = vcmask (!%p195_p10), 261120   ;;  %p234_p12 = scmp.lt.s32.totalorder (!%p195_p10), %s1121_s18, 1 }
  0x11   : > { %897 = vmatprep.subr.bf16.mxu1 (!%p195_p10), %v1048_v3  ;;  %s836_s11 = sshll.u32 (!%p195_p10), %s1121_s18, 7  ;;  %s706_s22 = scalar_lea.sflag (!%p195_p10), [#allocation3], %s222_s30 }
  0x12   : > { %v274_v16 = vsub.s32 (!%p195_p10), 0, %v1243_v15  ;;  %s1289_s21 = scalar_lea.hbm (!%p195_p10), %s1344_s4, %s836_s11 }
  0x14   : > { %898 = vmatpush3.bf16.msra.mxu1 (!%p195_p10), %v1048_v3  ;;  %v275_v18 = vrot.slane (!%p195_p10), %v1249_v17, %v274_v16 }
  0x15   : > { %899 = vmatprep.subr.bf16.mxu1 (!%p195_p10), %v1049_v12 }
  0x16   : > { %s1355_s5 = smov (!%p227_p11, %s801_s5), 31 }
  0x17   : > { %s802_s10 = sshll.u32 %s1355_s5, 2  ;;  %s800_s5 = sshll.u32 %s222_s30, 3 }
  0x18   : > { %s230_s13 = scalar_lea.vmem %s1340_s0, %s802_s10  ;;  %900 = vmatpush3.bf16.msra.mxu1 %v1049_v12  ;;  %v1133_v12 = vmov 0.0   ;;  %s1264_s6 = scalar_lea.vmem [#allocation2], %s800_s5 }
  0x19   : > { %v1039_v4 = vld [vmem:[%s230_s13] sm:$0xff]   ;;  %v1040_v5 = vld [vmem:[%s230_s13 + $0x8] sm:$0xff]   ;;  %v1041_v6 = vld [vmem:[%s230_s13 + $0x10] sm:$0xff]   ;;  %901 = vmatprep.subr.bf16.mxu1 %v1050_v13  ;;  %244 = vst.msk [vmem:[%s1264_s6] sm:$0xff] %vm243_vm4, %v1133_v12  ;;  %s235_s7 = scalar_select %p234_p12, %s1121_s18, 1 }
  0x1a   : > { %879 = vmatprep.mubr.msk.bf16.mxu0 %vm321_vm1, %v1039_v4  ;;  %v1042_v7 = vld [vmem:[%s230_s13 + $0x18] sm:$0xff]   ;;  %v1043_v8 = vld [vmem:[%s230_s13 + $0x20] sm:$0xff]   ;;  %v1044_v9 = vld [vmem:[%s230_s13 + $0x28] sm:$0xff]   ;;  %s719_s12 = sshll.u32 %s1264_s6, 4  ;;  %s1135_s18 = smov [#allocation2]   ;;  %s1291_s12 = int_to_ptr.vmem [resolvable:$true] %s719_s12 }
  0x1b   : > { %880 = vmatmul.mubr.msk.bf16.vlgmr.msra.gmra.mrb[0].mxu0 %vm321_vm1, %v1040_v5  ;;  %v1045_v10 = vld [vmem:[%s230_s13 + $0x30] sm:$0xff]   ;;  %v1046_v11 = vld [vmem:[%s230_s13 + $0x38] sm:$0xff]   ;;  %s236_s10 = scalar_lea.vmem %s1341_s1, %s235_s7  ;;  %s1051_s24 = scalar_lea.vmem %s1291_s12, 128 }
  0x1c   : > { %883 = vmatprep.mubr.msk.bf16.mxu0 %vm321_vm1, %v1041_v6  ;;  %902 = vmatpush3.bf16.msra.mxu1 %v1050_v13  ;;  %v473_v13 = vsub.s32 1, %v1243_v15  ;;  %p1052_p13 = scmp.ne.s32.totalorder %s1291_s12, %s1051_s24  ;;  %s1055_s26 = sshll.u32 %s1135_s18, 4  ;;  %s1056_s26 = int_to_ptr.vmem [resolvable:$false] %s1055_s26 }
  0x1d   : > { %s1057_s29 = scalar_lea.vmem %s1056_s26, 256  ;;  %p1058_p2 = scmp.lt.s32.totalorder %s1291_s12, %s1056_s26 }
  0x1e   : > { %v474_v14 = vrot.slane %v1249_v17, %v473_v13  ;;  %p1053_p0 = pnand %p1052_p13, %p1201_p4  ;;  %p1059_p3 = scmp.lt.s32.totalorder %s1057_s29, %s1051_s24 }
  0x20   : > { %p1054_p1 = pneg %p1053_p0  ;;  %p1060_p5 = por %p1059_p3, %p1058_p2 }
  0x22   : > { %p1061_p6 = pnand %p1060_p5, %p1054_p1 }
  0x23   : > { %884 = vmatmul.mubr.msk.bf16.gmra.mrb[4].mxu0 %vm321_vm1, %v1042_v7 }
  0x24   : > { %887 = vmatprep.mubr.msk.bf16.mxu0 %vm321_vm1, %v1043_v8 }
  0x2b   : > { %888 = vmatmul.mubr.msk.bf16.gmra.mrb[8].mxu0 %vm321_vm1, %v1044_v9 }
  0x2c   : > { %891 = vmatprep.mubr.msk.bf16.mxu0 %vm321_vm1, %v1045_v10 }
  0x33   : > { %892 = vmatmul.mubr.msk.bf16.gmra.mrb[12].mxu0 %vm321_vm1, %v1046_v11  ;;  %v1131_v11 = vmov 0.0|0.0  }
  0x34   : > { %954 = vmatprep.subr.bf16.mxu0 %v1131_v11  ;;  %951 = vmatprep.mubr.msk.f32.mxu0 %vm1132_vm3, %v1133_v12 }
  0xee   : > { %v881_v19 = vpop.f32.mrb[0].mxu0 }
  0xef   : > { %v393_v20 = vadd.f32 %v881_v19, %v275_v18  ;;  %v384_v21 = vpop.f32.mrb[1].mxu0 }
  0xf0   : > { %v385_v22 = vadd.f32 %v384_v21, %v275_v18  ;;  %v882_v23 = vpop.f32.mrb[2].mxu0 }
  0xf1   : > { %v396_v24 = vadd.f32 %v882_v23, %v275_v18  ;;  %v387_v25 = vpop.f32.mrb[3].mxu0  ;;  %v449_v27 = vmax.f32 %v393_v20, 0.0 }
  0xf2   : > { %v388_v26 = vadd.f32 %v387_v25, %v275_v18  ;;  %v447_v29 = vmax.f32 %v385_v22, 0.0 }
  0xf3   : > { %v450_v28 = vmax.f32 %v396_v24, 0.0 }
  0xf4   : > { %v448_v30 = vmax.f32 %v388_v26, 0.0 }
  0xf5   : > { %v464_v31 = vpack.c.bf16 %v450_v28, %v449_v27 }
  0xf6   : > { %v885_v32 = vpop.f32.mrb[4].mxu0  ;;  %v463_v33 = vpack.c.bf16 %v448_v30, %v447_v29 }
  0xf7   : > { %v409_v34 = vadd.f32 %v885_v32, %v275_v18  ;;  %v400_v35 = vpop.f32.mrb[5].mxu0 }
  0xf8   : > { %v401_v36 = vadd.f32 %v400_v35, %v275_v18  ;;  %v886_v37 = vpop.f32.mrb[6].mxu0  ;;  %903 = vmatprep.mubr.msk.bf16.mxu1 %vm499_vm2, %v463_v33 }
  0xf9   : > { %v412_v38 = vadd.f32 %v886_v37, %v275_v18  ;;  %v403_v39 = vpop.f32.mrb[7].mxu0  ;;  %904 = vmatmul.mubr.msk.bf16.vlgmr.msra.gmra.mrb[0].mxu1 %vm499_vm2, %v464_v31  ;;  %v453_v41 = vmax.f32 %v409_v34, 0.0 }
  0xfa   : > { %v404_v40 = vadd.f32 %v403_v39, %v275_v18  ;;  %v451_v43 = vmax.f32 %v401_v36, 0.0 }
  0xfb   : > { %v454_v42 = vmax.f32 %v412_v38, 0.0 }
  0xfc   : > { %v452_v44 = vmax.f32 %v404_v40, 0.0 }
  0xfd   : > { %v466_v45 = vpack.c.bf16 %v454_v42, %v453_v41 }
  0xfe   : > { %v465_v46 = vpack.c.bf16 %v452_v44, %v451_v43  ;;  %v889_v47 = vpop.f32.mrb[8].mxu0 }
  0xff   : > { %v425_v48 = vadd.f32 %v889_v47, %v275_v18  ;;  %v416_v49 = vpop.f32.mrb[9].mxu0 }
 0x100   : > { %v417_v50 = vadd.f32 %v416_v49, %v275_v18  ;;  %v890_v51 = vpop.f32.mrb[10].mxu0  ;;  %907 = vmatprep.mubr.msk.bf16.mxu1 %vm499_vm2, %v465_v46 }
 0x101   : > { %v428_v52 = vadd.f32 %v890_v51, %v275_v18  ;;  %v419_v53 = vpop.f32.mrb[11].mxu0  ;;  %908 = vmatmul.mubr.msk.bf16.gmra.mrb[4].mxu1 %vm499_vm2, %v466_v45  ;;  %v457_v55 = vmax.f32 %v425_v48, 0.0 }
 0x102   : > { %v420_v54 = vadd.f32 %v419_v53, %v275_v18  ;;  %v455_v57 = vmax.f32 %v417_v50, 0.0 }
 0x103   : > { %v458_v56 = vmax.f32 %v428_v52, 0.0 }
 0x104   : > { %v456_v58 = vmax.f32 %v420_v54, 0.0 }
 0x105   : > { %v468_v59 = vpack.c.bf16 %v458_v56, %v457_v55  ;;  %v832_v56 = vld [vmem:[%s236_s10] ss:$0 sm:$0xff] }
 0x106   : > { %v467_v60 = vpack.c.bf16 %v456_v58, %v455_v57  ;;  %v893_v61 = vpop.f32.mrb[12].mxu0  ;;  %vm628_vm5 = vcmp.eq.s32.totalorder %v1243_v15, %v832_v56  ;;  %v1134_v57 = vmov 1.0   ;;  %v631_v58 = vld [vmem:[%s1264_s6] sm:$0xff] }
 0x107   : > { %v441_v62 = vadd.f32 %v893_v61, %v275_v18  ;;  %v432_v63 = vpop.f32.mrb[13].mxu0 }
 0x108   : > { %v433_v0 = vadd.f32 %v432_v63, %v275_v18  ;;  %v894_v1 = vpop.f32.mrb[14].mxu0  ;;  %911 = vmatprep.mubr.msk.bf16.mxu1 %vm499_vm2, %v467_v60 }
 0x109   : > { %v444_v2 = vadd.f32 %v894_v1, %v275_v18  ;;  %v435_v3 = vpop.f32.mrb[15].mxu0  ;;  %912 = vmatmul.mubr.msk.bf16.gmra.mrb[8].mxu1 %vm499_vm2, %v468_v59  ;;  %v461_v5 = vmax.f32 %v441_v62, 0.0 }
 0x10a   : > { %v436_v4 = vadd.f32 %v435_v3, %v275_v18  ;;  %v459_v7 = vmax.f32 %v433_v0, 0.0 }
 0x10b   : > { %v462_v6 = vmax.f32 %v444_v2, 0.0 }
 0x10c   : > { %v460_v8 = vmax.f32 %v436_v4, 0.0 }
 0x10d   : > { %v470_v9 = vpack.c.bf16 %v462_v6, %v461_v5 }
 0x10e   : > { %v469_v10 = vpack.c.bf16 %v460_v8, %v459_v7 }
 0x110   : > { %915 = vmatprep.mubr.msk.bf16.mxu1 %vm499_vm2, %v469_v10 }
 0x111   : > { %916 = vmatmul.mubr.msk.bf16.gmra.mrb[12].mxu1 %vm499_vm2, %v470_v9 }
 0x1cc   : > { %v905_v16 = vpop.f32.mrb[0].mxu1 }
 0x1cd   : > { %v558_v18 = vpop.f32.mrb[1].mxu1  ;;  %v567_v20 = vadd.f32 %v905_v16, %v474_v14 }
 0x1ce   : > { %v906_v19 = vpop.f32.mrb[2].mxu1  ;;  %v559_v23 = vadd.f32 %v558_v18, %v474_v14 }
 0x1cf   : > { %v570_v21 = vadd.f32 %v906_v19, %v474_v14  ;;  %v561_v22 = vpop.f32.mrb[3].mxu1 }
 0x1d0   : > { %v562_v24 = vadd.f32 %v561_v22, %v474_v14 }
 0x1d1   : > { %v958_v25 = vpack.c.bf16 %v570_v21, %v567_v20 }
 0x1d2   : > { %v955_v26 = vpack.c.bf16 %v562_v24, %v559_v23 }
 0x1d4   : > { %v909_v27 = vpop.f32.mrb[4].mxu1  ;;  %956 = vmatpush3.bf16.msra.mxu0 %v955_v26 }
 0x1d5   : > { %v574_v28 = vpop.f32.mrb[5].mxu1  ;;  %957 = vmatprep.subr.bf16.mxu0 %v1131_v11  ;;  %v583_v30 = vadd.f32 %v909_v27, %v474_v14 }
 0x1d6   : > { %v910_v29 = vpop.f32.mrb[6].mxu1  ;;  %v575_v17 = vadd.f32 %v574_v28, %v474_v14 }
 0x1d7   : > { %v586_v31 = vadd.f32 %v910_v29, %v474_v14  ;;  %v577_v32 = vpop.f32.mrb[7].mxu1 }
 0x1d8   : > { %v578_v33 = vadd.f32 %v577_v32, %v474_v14  ;;  %959 = vmatpush3.bf16.msra.mxu0 %v958_v25 }
 0x1d9   : > { %v964_v34 = vpack.c.bf16 %v586_v31, %v583_v30  ;;  %960 = vmatprep.subr.bf16.mxu0 %v1131_v11 }
 0x1da   : > { %v961_v35 = vpack.c.bf16 %v578_v33, %v575_v17 }
 0x1dc   : > { %v913_v36 = vpop.f32.mrb[8].mxu1  ;;  %962 = vmatpush3.bf16.msra.mxu0 %v961_v35 }
 0x1dd   : > { %v590_v37 = vpop.f32.mrb[9].mxu1  ;;  %963 = vmatprep.subr.bf16.mxu0 %v1131_v11  ;;  %v599_v39 = vadd.f32 %v913_v36, %v474_v14 }
 0x1de   : > { %v914_v38 = vpop.f32.mrb[10].mxu1  ;;  %v591_v42 = vadd.f32 %v590_v37, %v474_v14 }
 0x1df   : > { %v602_v40 = vadd.f32 %v914_v38, %v474_v14  ;;  %v593_v41 = vpop.f32.mrb[11].mxu1 }
 0x1e0   : > { %v594_v43 = vadd.f32 %v593_v41, %v474_v14  ;;  %965 = vmatpush3.bf16.msra.mxu0 %v964_v34 }
 0x1e1   : > { %v970_v44 = vpack.c.bf16 %v602_v40, %v599_v39  ;;  %966 = vmatprep.subr.bf16.mxu0 %v1131_v11 }
 0x1e2   : > { %v967_v45 = vpack.c.bf16 %v594_v43, %v591_v42 }
 0x1e4   : > { %v917_v46 = vpop.f32.mrb[12].mxu1  ;;  %968 = vmatpush3.bf16.msra.mxu0 %v967_v45 }
 0x1e5   : > { %v606_v47 = vpop.f32.mrb[13].mxu1  ;;  %969 = vmatprep.subr.bf16.mxu0 %v1131_v11  ;;  %v615_v49 = vadd.f32 %v917_v46, %v474_v14 }
 0x1e6   : > { %v918_v48 = vpop.f32.mrb[14].mxu1  ;;  %v607_v52 = vadd.f32 %v606_v47, %v474_v14 }
 0x1e7   : > { %v618_v50 = vadd.f32 %v918_v48, %v474_v14  ;;  %v609_v51 = vpop.f32.mrb[15].mxu1 }
 0x1e8   : > { %v610_v53 = vadd.f32 %v609_v51, %v474_v14  ;;  %971 = vmatpush3.bf16.msra.mxu0 %v970_v44 }
 0x1e9   : > { %v976_v54 = vpack.c.bf16 %v618_v50, %v615_v49  ;;  %972 = vmatprep.subr.bf16.mxu0 %v1131_v11 }
 0x1ea   : > { %v973_v55 = vpack.c.bf16 %v610_v53, %v607_v52 }
 0x1ec   : > { %974 = vmatpush3.bf16.msra.mxu0 %v973_v55 }
 0x1ed   : > { %975 = vmatprep.subr.bf16.mxu0 %v1131_v11 }
 0x1f0   : > { %977 = vmatpush3.bf16.msra.mxu0 %v976_v54 }
 0x1f3   : > { %952 = vmatmul.mubr.msk.f32.vlgmr.msra.gmra.mrb[16].mxu0 %vm628_vm5, %v1134_v57 }
 0x2c6   : > { %v698_v59 = vpop.f32.mrb[16].mxu0 }
 0x2c7   : > { %v702_v60 = vadd.f32 %v698_v59, %v631_v58  ;;  %v953_v61 = vpop.f32.mrb[17].mxu0 }
 0x2c9   : > { %704 = vst.msk [vmem:[%s1264_s6] sm:$0xff] %vm243_vm4, %v702_v60 }
 0x2ca   : > { %1064 = shalt.err (!%p1061_p6)
}
 0x2cb   : > { %s1065_s30 = scalar_lea.hbm %s1289_s21, 128  ;;  %s1069_s7 = scalar_lea.hbm %s1344_s4, 256 }
 0x2cc   : > { %p1066_p7 = scmp.ne.s32.totalorder %s1289_s21, %s1065_s30  ;;  %p1070_p11 = scmp.lt.u32.totalorder %s1289_s21, %s1344_s4 }
 0x2cd   : > { %p1071_p12 = scmp.lt.u32.totalorder %s1069_s7, %s1065_s30  ;;  %p1073_p0 = scmp.lt.u32.totalorder %s1065_s30, %s1289_s21 }
 0x2ce   : > { %p1067_p9 = pnand %p1066_p7, %p1201_p4 }
 0x2cf   : > { %p1072_p13 = por %p1071_p12, %p1070_p11 }
 0x2d0   : > { %p1068_p10 = pneg %p1067_p9 }
 0x2d1   : > { %p1074_p1 = por %p1073_p0, %p1072_p13 }
 0x2d3   : > { %p1075_p2 = pnand %p1074_p1, %p1068_p10 }
 0x2d5   : > { %1078 = shalt.err (!%p1075_p2)
}
 0x2d6   : > { %979 = dma.vmem_to_hbm [thread:$0]  (%p1201_p4), %s1291_s12, 128, %s1289_s21, %s706_s22  }
 0x2d7 PF: > { %p985_p3 = scmp.ge.s32.totalorder %s1129_s20, 2  ;;  %s731_s10 = sand.u32 1, %s1109_s15  }
 0x2d8   : > { %s732_s11 = scalar_lea.sflag [#allocation3], %s731_s10 }
 0x2d9   : > { %p982_p5 = pnand %p985_p3, %p1208_p8 }
 0x2db   : > { %1104 = dma.done.wait (!%p982_p5), %s732_s11, 128  }
 0x2dc   : > { %1106 = vsyncadd (!%p982_p5), %s732_s11, 4294967168  ;;  %s17_s20 = sadd.s32 1, %s1129_s20   ;;  %s1347_s15 = smov %s1113_s16 }
 0x2dd   : > { %p14_p6 = scmp.ge.s32.totalorder %s17_s20, 4   ;;  %s1348_s16 = smov %s1117_s17 }
 0x2de   : > { %s1349_s17 = smov %s1214_s28  ;;  %s1350_s18 = smov %s1125_s19 }
 0x2df   : > { %s1351_s19 = smov %s1353_s23  ;;  %16 = sbr.rel (!%p14_p6) target bundleno = 4 (0x4), region = 78 }
 0x2e6   :  { %737 = vsyncpa [#allocation3], 1 }
 0x2e7   :  { %739 = vsyncpa [#allocation3 + $0x1], 1 }

</bundles_post_ra>
